<compile_context>
chip_gen: v6e
topology: v6e:2x2x1
jax: 0.10.0
libtpu: 0.0.40
codegen_flags: <defaults>
</compile_context>

<pallas_src>
import functools

import jax
import jax.numpy as jnp
from jax.experimental import pallas as pl
from jax.experimental.pallas import tpu as pltpu

LN_EPS = 1e-5  # PyTorch nn.LayerNorm default


def _round_up(x, m):
    return ((x + m - 1) // m) * m


def nn_classifier_kernel(idx_ref, gi_ref, gj_ref, w2_ref, p1_ref, p2_ref,
                         out_ref, *, d_cc_p, d_cp_p, h1):
    """One batch tile. Layout: batch on lanes, features on sublanes."""
    num_nodes = gi_ref.shape[1]
    tile = idx_ref.shape[1]

    # ---- fused embedding gather: one-hot (nodes x tile) matmuls ------------
    idx = idx_ref[...]                                               # (2, tile) int32
    node_iota = jax.lax.broadcasted_iota(jnp.int32, (num_nodes, tile), 0)
    oh_i = (node_iota == idx[0:1, :]).astype(jnp.float32)            # (nodes, tile)
    oh_j = (node_iota == idx[1:2, :]).astype(jnp.float32)
    # G_i / G_j carry the folded first-Linear and classifier-cc rows, so these
    # two MXU pushes do gather + Linear1 partials + wc·n_cc simultaneously.
    gi = jnp.dot(gi_ref[...], oh_i, preferred_element_type=jnp.float32)  # (d_rows, tile)
    gj = jnp.dot(gj_ref[...], oh_j, preferred_element_type=jnp.float32)

    off_cp = d_cc_p
    off_h = d_cc_p + d_cp_p
    off_wc = off_h + h1
    ni_cc, nj_cc = gi[:d_cc_p], gj[:d_cc_p]            # raw cc rows (zero padded to 8)
    ni_cp, nj_cp = gi[off_cp:off_h], gj[off_cp:off_h]  # raw cp rows (zero padded to 8)
    h_i, h_j = gi[off_h:off_wc], gj[off_h:off_wc]      # W1_i @ ni_cp / W1_j @ nj_cp
    wc_i_dot = gi[off_wc:off_wc + 1]                   # (1, tile): wc_i · ni_cc
    wc_j_dot = gj[off_wc:off_wc + 1]                   # (1, tile): wc_j · nj_cc

    # ---- similarities: elementwise mult + sublane reduce (padded rows are 0)
    sim_cc = jnp.sum(ni_cc * nj_cc, axis=0, keepdims=True)           # (1, tile)
    sim_cp = jnp.sum(ni_cp * nj_cp, axis=0, keepdims=True)

    # ---- packed per-feature params (static slices of resident tiles) -------
    w1_s = p1_ref[:, 0:1]
    b1, g1, be1 = p1_ref[:, 1:2], p1_ref[:, 2:3], p1_ref[:, 3:4]
    b2, g2, be2 = p2_ref[:, 0:1], p2_ref[:, 1:2], p2_ref[:, 2:3]
    wc_h = p2_ref[:, 3:4]
    wc_s = p2_ref[0:1, 4:5]
    bc = p2_ref[0:1, 5:6]

    def relu_layernorm(x, gamma, beta):
        x = jnp.maximum(x, 0.0)
        mu = jnp.mean(x, axis=0, keepdims=True)                       # over features (sublanes)
        var = jnp.mean(x * x, axis=0, keepdims=True) - mu * mu        # one-pass E[x^2]-mu^2
        return (x - mu) * jax.lax.rsqrt(var + LN_EPS) * gamma + beta  # Dropout: identity (eval)

    # ---- cp block 1: Linear(2*d_cp+1 -> H1); matmul part folded into gather
    h = h_i + h_j + w1_s * sim_cp + b1
    h = relu_layernorm(h, g1, be1)

    # ---- cp block 2: Linear(H1 -> H2) ----
    h = jnp.dot(w2_ref[...], h, preferred_element_type=jnp.float32) + b2
    h = relu_layernorm(h, g2, be2)

    # ---- classifier (dim_output == 1): remaining terms on VPU + sublane reduce
    logits = (wc_i_dot + wc_j_dot + wc_s * sim_cc
              + jnp.sum(h * wc_h, axis=0, keepdims=True) + bc)
    out_ref[...] = jax.nn.sigmoid(logits)                            # lane-dense (1, tile) store


def nn_classifier_forward(node_pairs, z_cc, z_cp, params, *, tile=None):
    """NNClassifier.forward (eval). params are PyTorch-layout (w: [out, in])."""
    n = node_pairs.shape[0]
    num_nodes, d_cc = z_cc.shape
    d_cp = z_cp.shape[1]
    assert z_cp.shape[0] == num_nodes
    h1 = params["w1"].shape[0]
    h2 = params["w2"].shape[0]
    dim_output = params["wc"].shape[0]
    if dim_output != 1:
        raise NotImplementedError("classifier reduction path assumes dim_output == 1")
    assert params["w1"].shape[1] == 2 * d_cp + 1
    assert params["wc"].shape[1] == 2 * d_cc + 1 + h2

    d_cc_p = _round_up(d_cc, 8)                      # sublane-aligned section widths
    d_cp_p = _round_up(d_cp, 8)
    d_rows = d_cc_p + d_cp_p + h1 + 1

    # ---- tile selection: few fat steps, VMEM-bounded, >=2 steps for v7x ----
    if tile is None:
        per_lane_bytes = 4 * (2 * num_nodes + 2 * d_rows + h1 + h2 + 8)
        lane_cap = max(128, min(4096, (int((8 << 20) / per_lane_bytes) // 128) * 128))
        target = n if n <= 128 else -(-n // 2)       # aim for 2 grid steps (v7x 2 TCs)
        tile = min(lane_cap, _round_up(max(target, 1), 128))
    tile = _round_up(int(tile), 128)
    n_pad = _round_up(n, tile)

    # ---- host-side prep (one shot): pad batch, fold params into gather LHS -
    idx = node_pairs.astype(jnp.int32).T                              # (2, n): batch -> lanes
    if n_pad != n:
        idx = jnp.pad(idx, ((0, 0), (0, n_pad - n)))                  # padded cols sliced off

    w1 = params["w1"].astype(jnp.float32)
    w1_i, w1_j = w1[:, :d_cp], w1[:, d_cp:2 * d_cp]
    w1_s = w1[:, 2 * d_cp:2 * d_cp + 1]
    wc = params["wc"].astype(jnp.float32)[0]
    wc_i, wc_j = wc[:d_cc], wc[d_cc:2 * d_cc]
    wc_s, wc_h = wc[2 * d_cc], wc[2 * d_cc + 1:]

    z_cc_t = z_cc.astype(jnp.float32).T                               # (d_cc, nodes)
    z_cp_t = z_cp.astype(jnp.float32).T                               # (d_cp, nodes)

    def pad_rows(a, rows):
        return jnp.pad(a, ((0, rows - a.shape[0]), (0, 0)))

    def gather_lhs(w1_half, wc_half):
        # rows: [z_cc (pad 8) | z_cp (pad 8) | W1_half @ z_cp | wc_half @ z_cc]
        return jnp.concatenate([
            pad_rows(z_cc_t, d_cc_p),
            pad_rows(z_cp_t, d_cp_p),
            w1_half @ z_cp_t,
            (wc_half @ z_cc_t)[None, :],
        ], axis=0)

    g_i = gather_lhs(w1_i, wc_i)                                      # (d_rows, nodes)
    g_j = gather_lhs(w1_j, wc_j)

    p1 = jnp.concatenate([
        w1_s,
        params["b1"].reshape(-1, 1),
        params["g1"].reshape(-1, 1),
        params["be1"].reshape(-1, 1)], axis=1).astype(jnp.float32)     # (H1, 4)
    scal = jnp.zeros((h2, 2), jnp.float32).at[0, 0].set(wc_s).at[0, 1].set(
        params["bc"].reshape(-1)[0])
    p2 = jnp.concatenate([
        params["b2"].reshape(-1, 1),
        params["g2"].reshape(-1, 1),
        params["be2"].reshape(-1, 1),
        wc_h.reshape(-1, 1),
        scal], axis=1).astype(jnp.float32)                             # (H2, 6)
    w2 = params["w2"].astype(jnp.float32)                              # (H2, H1)

    def resident(a):  # whole array, constant index_map -> DMA'd once, stays VMEM-resident
        return pl.BlockSpec(a.shape, lambda t: (0, 0))

    out = pl.pallas_call(
        functools.partial(nn_classifier_kernel,
                          d_cc_p=d_cc_p, d_cp_p=d_cp_p, h1=h1),
        grid=(n_pad // tile,),
        in_specs=[pl.BlockSpec((2, tile), lambda t: (0, t))]           # node-pair indices
                 + [resident(a) for a in (g_i, g_j, w2, p1, p2)],
        out_specs=pl.BlockSpec((1, tile), lambda t: (0, t)),           # lane-dense output tile
        out_shape=jax.ShapeDtypeStruct((1, n_pad), jnp.float32),
        compiler_params=pltpu.CompilerParams(
            dimension_semantics=("parallel",),                         # 2 TCs on v7x
            vmem_limit_bytes=32 * 1024 * 1024,
        ),
    )(idx, g_i, g_j, w2, p1, p2)

    return out[0, :n].reshape(n, dim_output)


def reference_forward(node_pairs, z_cc, z_cp, params):
    """Pure-JAX reference mirroring the PyTorch forward (eval mode)."""
    ni_cc = z_cc[node_pairs[:, 0]]
    nj_cc = z_cc[node_pairs[:, 1]]
    sig_cc = jnp.concatenate(
        [ni_cc, nj_cc, jnp.sum(ni_cc * nj_cc, -1, keepdims=True)], axis=-1)

    ni_cp = z_cp[node_pairs[:, 0]]
    nj_cp = z_cp[node_pairs[:, 1]]
    h = jnp.concatenate(
        [ni_cp, nj_cp, jnp.sum(ni_cp * nj_cp, -1, keepdims=True)], axis=-1)

    for l in ("1", "2"):
        h = h @ params["w" + l].T + params["b" + l]
        h = jnp.maximum(h, 0.0)
        mu = jnp.mean(h, -1, keepdims=True)
        var = jnp.mean((h - mu) ** 2, -1, keepdims=True)
        h = (h - mu) / jnp.sqrt(var + LN_EPS)
        h = h * params["g" + l] + params["be" + l]

    sig = jnp.concatenate([sig_cc, h], axis=-1)
    return jax.nn.sigmoid(sig @ params["wc"].T + params["bc"])


def make_params(key, dim_in_cp, hidden_cp, dim_cc_sig, dim_output):
    """Deterministic synthetic parameters in PyTorch layout (w: [out, in])."""
    dims_cp = [dim_in_cp * 2 + 1] + hidden_cp
    ks = jax.random.split(key, 6)
    params = {}
    for i, l in enumerate(("1", "2")):
        fan_in, fan_out = dims_cp[i], dims_cp[i + 1]
        params["w" + l] = 0.1 * jax.random.normal(ks[2 * i], (fan_out, fan_in), jnp.float32)
        params["b" + l] = 0.1 * jax.random.normal(ks[2 * i + 1], (fan_out,), jnp.float32)
        params["g" + l] = jnp.ones((fan_out,), jnp.float32)    # LayerNorm weight
        params["be" + l] = jnp.zeros((fan_out,), jnp.float32)  # LayerNorm bias
    dim_end = dim_cc_sig + dims_cp[-1]
    params["wc"] = 0.1 * jax.random.normal(ks[4], (dim_output, dim_end), jnp.float32)
    params["bc"] = 0.1 * jax.random.normal(ks[5], (dim_output,), jnp.float32)
    return params


if __name__ == "__main__":
    key = jax.random.PRNGKey(0)
    k_pairs, k_cc, k_cp, k_par = jax.random.split(key, 4)

    # Small, module-consistent shapes.
    num_nodes = 32
    dim_emb_cc = dim_input_cc = 8   # raw cc signal dim = 2*8 + 1 = 17
    dim_emb_cp = dim_input_cp = 8   # raw cp signal dim = 2*8 + 1 = 17
    dim_hidden_cp = [32, 16]        # num_layers_cp = 2
    dim_output = 1
    batch = 512                     # auto tile -> 2 grid steps of 256 lanes

    node_pairs = jax.random.randint(k_pairs, (batch, 2), 0, num_nodes, jnp.int32)
    z_cc = jax.random.normal(k_cc, (num_nodes, dim_emb_cc), jnp.float32)
    z_cp = jax.random.normal(k_cp, (num_nodes, dim_emb_cp), jnp.float32)

    params = make_params(k_par, dim_input_cp, dim_hidden_cp,
                         dim_cc_sig=2 * dim_input_cc + 1, dim_output=dim_output)

    out = nn_classifier_forward(node_pairs, z_cc, z_cp, params)
    out = jax.block_until_ready(out)

    ref = reference_forward(node_pairs, z_cc, z_cp, params)
    assert out.shape == (batch, dim_output)
    err = float(jnp.max(jnp.abs(out - ref)))
    assert jnp.allclose(out, ref, atol=1e-4, rtol=1e-4), err

    print("KERNEL_OK")
</pallas_src>

<mosaic_0001>
module attributes {stable_mosaic.version = 11 : i64} {
  func.func @nn_classifier_kernel(%arg0: i32, %arg1: memref<2x256xi32, #tpu.memory_space<vmem>>, %arg2: memref<49x32xf32, #tpu.memory_space<vmem>>, %arg3: memref<49x32xf32, #tpu.memory_space<vmem>>, %arg4: memref<16x32xf32, #tpu.memory_space<vmem>>, %arg5: memref<32x4xf32, #tpu.memory_space<vmem>>, %arg6: memref<16x6xf32, #tpu.memory_space<vmem>>, %arg7: memref<1x256xf32, #tpu.memory_space<vmem>>) attributes {dimension_semantics = [#tpu.dimension_semantics<parallel>], iteration_bounds = array<i64: 2>, scalar_prefetch = 0 : i64, scratch_operands = 0 : i64, tpu.core_type = #tpu.core_type<tc>, window_params = [{transform_indices = @transform_0, window_bounds = array<i64: 2, 256>}, {pipeline_mode = #tpu.pipeline_mode<synchronous>, transform_indices = @transform_1, window_bounds = array<i64: 49, 32>}, {pipeline_mode = #tpu.pipeline_mode<synchronous>, transform_indices = @transform_2, window_bounds = array<i64: 49, 32>}, {pipeline_mode = #tpu.pipeline_mode<synchronous>, transform_indices = @transform_3, window_bounds = array<i64: 16, 32>}, {pipeline_mode = #tpu.pipeline_mode<synchronous>, transform_indices = @transform_4, window_bounds = array<i64: 32, 4>}, {pipeline_mode = #tpu.pipeline_mode<synchronous>, transform_indices = @transform_5, window_bounds = array<i64: 16, 6>}, {transform_indices = @transform_6, window_bounds = array<i64: 1, 256>}]} {
    %c0 = arith.constant 0 : index
    %c0_0 = arith.constant 0 : index
    %0 = vector.load %arg1[%c0, %c0_0] : memref<2x256xi32, #tpu.memory_space<vmem>>, vector<2x256xi32>
    %1 = tpu.iota {dimensions = array<i32: 0>} : vector<32x256xi32>
    %2 = vector.extract_strided_slice %0 {offsets = [0, 0], sizes = [1, 256], strides = [1, 1]} : vector<2x256xi32> to vector<1x256xi32>
    %3 = vector.broadcast %2 : vector<1x256xi32> to vector<32x256xi32>
    %4 = arith.cmpi eq, %1, %3 : vector<32x256xi32>
    %5 = arith.extui %4 : vector<32x256xi1> to vector<32x256xi32>
    %6 = arith.sitofp %5 : vector<32x256xi32> to vector<32x256xf32>
    %7 = vector.extract_strided_slice %0 {offsets = [1, 0], sizes = [1, 256], strides = [1, 1]} : vector<2x256xi32> to vector<1x256xi32>
    %8 = vector.broadcast %7 : vector<1x256xi32> to vector<32x256xi32>
    %9 = arith.cmpi eq, %1, %8 : vector<32x256xi32>
    %10 = arith.extui %9 : vector<32x256xi1> to vector<32x256xi32>
    %11 = arith.sitofp %10 : vector<32x256xi32> to vector<32x256xf32>
    %c0_1 = arith.constant 0 : index
    %c0_2 = arith.constant 0 : index
    %12 = vector.load %arg2[%c0_1, %c0_2] : memref<49x32xf32, #tpu.memory_space<vmem>>, vector<49x32xf32>
    %cst = arith.constant dense<0.000000e+00> : vector<49x256xf32>
    %13 = tpu.matmul %12, %6, %cst {dimension_numbers = #tpu.dot_dimension_numbers<[1], [0], [0], [1], [0, 0, 1, 1], [], []>} : vector<49x32xf32>, vector<32x256xf32>, vector<49x256xf32> -> vector<49x256xf32>
    %c0_3 = arith.constant 0 : index
    %c0_4 = arith.constant 0 : index
    %14 = vector.load %arg3[%c0_3, %c0_4] : memref<49x32xf32, #tpu.memory_space<vmem>>, vector<49x32xf32>
    %cst_5 = arith.constant dense<0.000000e+00> : vector<49x256xf32>
    %15 = tpu.matmul %14, %11, %cst_5 {dimension_numbers = #tpu.dot_dimension_numbers<[1], [0], [0], [1], [0, 0, 1, 1], [], []>} : vector<49x32xf32>, vector<32x256xf32>, vector<49x256xf32> -> vector<49x256xf32>
    %16 = vector.extract_strided_slice %13 {offsets = [0, 0], sizes = [8, 256], strides = [1, 1]} : vector<49x256xf32> to vector<8x256xf32>
    %17 = vector.extract_strided_slice %15 {offsets = [0, 0], sizes = [8, 256], strides = [1, 1]} : vector<49x256xf32> to vector<8x256xf32>
    %18 = vector.extract_strided_slice %13 {offsets = [8, 0], sizes = [8, 256], strides = [1, 1]} : vector<49x256xf32> to vector<8x256xf32>
    %19 = vector.extract_strided_slice %15 {offsets = [8, 0], sizes = [8, 256], strides = [1, 1]} : vector<49x256xf32> to vector<8x256xf32>
    %20 = vector.extract_strided_slice %13 {offsets = [16, 0], sizes = [32, 256], strides = [1, 1]} : vector<49x256xf32> to vector<32x256xf32>
    %21 = vector.extract_strided_slice %15 {offsets = [16, 0], sizes = [32, 256], strides = [1, 1]} : vector<49x256xf32> to vector<32x256xf32>
    %22 = vector.extract_strided_slice %13 {offsets = [48, 0], sizes = [1, 256], strides = [1, 1]} : vector<49x256xf32> to vector<1x256xf32>
    %23 = vector.extract_strided_slice %15 {offsets = [48, 0], sizes = [1, 256], strides = [1, 1]} : vector<49x256xf32> to vector<1x256xf32>
    %24 = arith.mulf %16, %17 : vector<8x256xf32>
    %cst_6 = arith.constant dense<0.000000e+00> : vector<256xf32>
    %25 = vector.multi_reduction <add>, %24, %cst_6 [0] : vector<8x256xf32> to vector<256xf32>
    %26 = vector.shape_cast %25 : vector<256xf32> to vector<1x256xf32>
    %27 = arith.mulf %18, %19 : vector<8x256xf32>
    %cst_7 = arith.constant dense<0.000000e+00> : vector<256xf32>
    %28 = vector.multi_reduction <add>, %27, %cst_7 [0] : vector<8x256xf32> to vector<256xf32>
    %29 = vector.shape_cast %28 : vector<256xf32> to vector<1x256xf32>
    %c0_8 = arith.constant 0 : index
    %c0_9 = arith.constant 0 : index
    %30 = vector.load %arg5[%c0_8, %c0_9] : memref<32x4xf32, #tpu.memory_space<vmem>>, vector<32x1xf32>
    %c0_10 = arith.constant 0 : index
    %c1 = arith.constant 1 : index
    %31 = vector.load %arg5[%c0_10, %c1] : memref<32x4xf32, #tpu.memory_space<vmem>>, vector<32x1xf32>
    %c0_11 = arith.constant 0 : index
    %c2 = arith.constant 2 : index
    %32 = vector.load %arg5[%c0_11, %c2] : memref<32x4xf32, #tpu.memory_space<vmem>>, vector<32x1xf32>
    %c0_12 = arith.constant 0 : index
    %c3 = arith.constant 3 : index
    %33 = vector.load %arg5[%c0_12, %c3] : memref<32x4xf32, #tpu.memory_space<vmem>>, vector<32x1xf32>
    %c0_13 = arith.constant 0 : index
    %c0_14 = arith.constant 0 : index
    %34 = vector.load %arg6[%c0_13, %c0_14] : memref<16x6xf32, #tpu.memory_space<vmem>>, vector<16x1xf32>
    %c0_15 = arith.constant 0 : index
    %c1_16 = arith.constant 1 : index
    %35 = vector.load %arg6[%c0_15, %c1_16] : memref<16x6xf32, #tpu.memory_space<vmem>>, vector<16x1xf32>
    %c0_17 = arith.constant 0 : index
    %c2_18 = arith.constant 2 : index
    %36 = vector.load %arg6[%c0_17, %c2_18] : memref<16x6xf32, #tpu.memory_space<vmem>>, vector<16x1xf32>
    %c0_19 = arith.constant 0 : index
    %c3_20 = arith.constant 3 : index
    %37 = vector.load %arg6[%c0_19, %c3_20] : memref<16x6xf32, #tpu.memory_space<vmem>>, vector<16x1xf32>
    %c0_21 = arith.constant 0 : index
    %c4 = arith.constant 4 : index
    %38 = vector.load %arg6[%c0_21, %c4] : memref<16x6xf32, #tpu.memory_space<vmem>>, vector<1x1xf32>
    %c0_22 = arith.constant 0 : index
    %c5 = arith.constant 5 : index
    %39 = vector.load %arg6[%c0_22, %c5] : memref<16x6xf32, #tpu.memory_space<vmem>>, vector<1x1xf32>
    %40 = arith.addf %20, %21 : vector<32x256xf32>
    %41 = vector.broadcast %30 : vector<32x1xf32> to vector<32x256xf32>
    %42 = vector.broadcast %29 : vector<1x256xf32> to vector<32x256xf32>
    %43 = arith.mulf %41, %42 : vector<32x256xf32>
    %44 = arith.addf %40, %43 : vector<32x256xf32>
    %45 = vector.broadcast %31 : vector<32x1xf32> to vector<32x256xf32>
    %46 = arith.addf %44, %45 : vector<32x256xf32>
    %cst_23 = arith.constant 0.000000e+00 : f32
    %47 = vector.broadcast %cst_23 : f32 to vector<32x256xf32>
    %48 = arith.maximumf %46, %47 : vector<32x256xf32>
    %cst_24 = arith.constant dense<0.000000e+00> : vector<256xf32>
    %49 = vector.multi_reduction <add>, %48, %cst_24 [0] : vector<32x256xf32> to vector<256xf32>
    %50 = vector.shape_cast %49 : vector<256xf32> to vector<1x256xf32>
    %cst_25 = arith.constant 3.200000e+01 : f32
    %51 = vector.broadcast %cst_25 : f32 to vector<1x256xf32>
    %52 = arith.divf %50, %51 : vector<1x256xf32>
    %53 = arith.mulf %48, %48 : vector<32x256xf32>
    %cst_26 = arith.constant dense<0.000000e+00> : vector<256xf32>
    %54 = vector.multi_reduction <add>, %53, %cst_26 [0] : vector<32x256xf32> to vector<256xf32>
    %55 = vector.shape_cast %54 : vector<256xf32> to vector<1x256xf32>
    %cst_27 = arith.constant 3.200000e+01 : f32
    %56 = vector.broadcast %cst_27 : f32 to vector<1x256xf32>
    %57 = arith.divf %55, %56 : vector<1x256xf32>
    %58 = arith.mulf %52, %52 : vector<1x256xf32>
    %59 = arith.subf %57, %58 : vector<1x256xf32>
    %60 = vector.broadcast %52 : vector<1x256xf32> to vector<32x256xf32>
    %61 = arith.subf %48, %60 : vector<32x256xf32>
    %cst_28 = arith.constant 9.99999974E-6 : f32
    %62 = vector.broadcast %cst_28 : f32 to vector<1x256xf32>
    %63 = arith.addf %59, %62 : vector<1x256xf32>
    %64 = math.rsqrt %63 : vector<1x256xf32>
    %65 = vector.broadcast %64 : vector<1x256xf32> to vector<32x256xf32>
    %66 = arith.mulf %61, %65 : vector<32x256xf32>
    %67 = vector.broadcast %32 : vector<32x1xf32> to vector<32x256xf32>
    %68 = arith.mulf %66, %67 : vector<32x256xf32>
    %69 = vector.broadcast %33 : vector<32x1xf32> to vector<32x256xf32>
    %70 = arith.addf %68, %69 : vector<32x256xf32>
    %c0_29 = arith.constant 0 : index
    %c0_30 = arith.constant 0 : index
    %71 = vector.load %arg4[%c0_29, %c0_30] : memref<16x32xf32, #tpu.memory_space<vmem>>, vector<16x32xf32>
    %cst_31 = arith.constant dense<0.000000e+00> : vector<16x256xf32>
    %72 = tpu.matmul %71, %70, %cst_31 {dimension_numbers = #tpu.dot_dimension_numbers<[1], [0], [0], [1], [0, 0, 1, 1], [], []>} : vector<16x32xf32>, vector<32x256xf32>, vector<16x256xf32> -> vector<16x256xf32>
    %73 = vector.broadcast %34 : vector<16x1xf32> to vector<16x256xf32>
    %74 = arith.addf %72, %73 : vector<16x256xf32>
    %cst_32 = arith.constant 0.000000e+00 : f32
    %75 = vector.broadcast %cst_32 : f32 to vector<16x256xf32>
    %76 = arith.maximumf %74, %75 : vector<16x256xf32>
    %cst_33 = arith.constant dense<0.000000e+00> : vector<256xf32>
    %77 = vector.multi_reduction <add>, %76, %cst_33 [0] : vector<16x256xf32> to vector<256xf32>
    %78 = vector.shape_cast %77 : vector<256xf32> to vector<1x256xf32>
    %cst_34 = arith.constant 1.600000e+01 : f32
    %79 = vector.broadcast %cst_34 : f32 to vector<1x256xf32>
    %80 = arith.divf %78, %79 : vector<1x256xf32>
    %81 = arith.mulf %76, %76 : vector<16x256xf32>
    %cst_35 = arith.constant dense<0.000000e+00> : vector<256xf32>
    %82 = vector.multi_reduction <add>, %81, %cst_35 [0] : vector<16x256xf32> to vector<256xf32>
    %83 = vector.shape_cast %82 : vector<256xf32> to vector<1x256xf32>
    %cst_36 = arith.constant 1.600000e+01 : f32
    %84 = vector.broadcast %cst_36 : f32 to vector<1x256xf32>
    %85 = arith.divf %83, %84 : vector<1x256xf32>
    %86 = arith.mulf %80, %80 : vector<1x256xf32>
    %87 = arith.subf %85, %86 : vector<1x256xf32>
    %88 = vector.broadcast %80 : vector<1x256xf32> to vector<16x256xf32>
    %89 = arith.subf %76, %88 : vector<16x256xf32>
    %cst_37 = arith.constant 9.99999974E-6 : f32
    %90 = vector.broadcast %cst_37 : f32 to vector<1x256xf32>
    %91 = arith.addf %87, %90 : vector<1x256xf32>
    %92 = math.rsqrt %91 : vector<1x256xf32>
    %93 = vector.broadcast %92 : vector<1x256xf32> to vector<16x256xf32>
    %94 = arith.mulf %89, %93 : vector<16x256xf32>
    %95 = vector.broadcast %35 : vector<16x1xf32> to vector<16x256xf32>
    %96 = arith.mulf %94, %95 : vector<16x256xf32>
    %97 = vector.broadcast %36 : vector<16x1xf32> to vector<16x256xf32>
    %98 = arith.addf %96, %97 : vector<16x256xf32>
    %99 = arith.addf %22, %23 : vector<1x256xf32>
    %100 = vector.broadcast %38 : vector<1x1xf32> to vector<1x256xf32>
    %101 = arith.mulf %100, %26 : vector<1x256xf32>
    %102 = arith.addf %99, %101 : vector<1x256xf32>
    %103 = vector.broadcast %37 : vector<16x1xf32> to vector<16x256xf32>
    %104 = arith.mulf %98, %103 : vector<16x256xf32>
    %cst_38 = arith.constant dense<0.000000e+00> : vector<256xf32>
    %105 = vector.multi_reduction <add>, %104, %cst_38 [0] : vector<16x256xf32> to vector<256xf32>
    %106 = vector.shape_cast %105 : vector<256xf32> to vector<1x256xf32>
    %107 = arith.addf %102, %106 : vector<1x256xf32>
    %108 = vector.broadcast %39 : vector<1x1xf32> to vector<1x256xf32>
    %109 = arith.addf %107, %108 : vector<1x256xf32>
    %110 = arith.negf %109 : vector<1x256xf32>
    %111 = math.exp %110 : vector<1x256xf32>
    %cst_39 = arith.constant 1.000000e+00 : f32
    %112 = vector.broadcast %cst_39 : f32 to vector<1x256xf32>
    %113 = arith.addf %112, %111 : vector<1x256xf32>
    %114 = arith.divf %112, %113 : vector<1x256xf32>
    %c0_40 = arith.constant 0 : index
    %c0_41 = arith.constant 0 : index
    %115 = vector.load %arg7[%c0_40, %c0_41] : memref<1x256xf32, #tpu.memory_space<vmem>>, vector<1x256xf32>
    tpu.vector_store %arg7[%c0_40, %c0_41], %114 {strides = array<i32>} : memref<1x256xf32, #tpu.memory_space<vmem>>, vector<1x256xf32>,
    return
  }
  func.func @transform_0(%arg0: i32) -> (i32, i32) {
    %c0_i32 = arith.constant 0 : i32
    %c0_i32_0 = arith.constant 0 : i32
    return %c0_i32, %arg0 : i32, i32
  }
  func.func @transform_1(%arg0: i32) -> (i32, i32) {
    %c0_i32 = arith.constant 0 : i32
    %c0_i32_0 = arith.constant 0 : i32
    %c0_i32_1 = arith.constant 0 : i32
    return %c0_i32, %c0_i32_0 : i32, i32
  }
  func.func @transform_2(%arg0: i32) -> (i32, i32) {
    %c0_i32 = arith.constant 0 : i32
    %c0_i32_0 = arith.constant 0 : i32
    %c0_i32_1 = arith.constant 0 : i32
    return %c0_i32, %c0_i32_0 : i32, i32
  }
  func.func @transform_3(%arg0: i32) -> (i32, i32) {
    %c0_i32 = arith.constant 0 : i32
    %c0_i32_0 = arith.constant 0 : i32
    %c0_i32_1 = arith.constant 0 : i32
    return %c0_i32, %c0_i32_0 : i32, i32
  }
  func.func @transform_4(%arg0: i32) -> (i32, i32) {
    %c0_i32 = arith.constant 0 : i32
    %c0_i32_0 = arith.constant 0 : i32
    %c0_i32_1 = arith.constant 0 : i32
    return %c0_i32, %c0_i32_0 : i32, i32
  }
  func.func @transform_5(%arg0: i32) -> (i32, i32) {
    %c0_i32 = arith.constant 0 : i32
    %c0_i32_0 = arith.constant 0 : i32
    %c0_i32_1 = arith.constant 0 : i32
    return %c0_i32, %c0_i32_0 : i32, i32
  }
  func.func @transform_6(%arg0: i32) -> (i32, i32) {
    %c0_i32 = arith.constant 0 : i32
    %c0_i32_0 = arith.constant 0 : i32
    return %c0_i32, %arg0 : i32, i32
  }
}

</mosaic_0001>

<bundles_post_ra>
// kernel: tpu_custom_call.1
= control target key start
LH: loop header
LB: loop body
LE: loop exit
PB: predicated region body
PF: predicated region fallthrough
CT: control target
= control target key end

     0   :  { %11 = vsyncpa [#allocation3], 0  ;;  %s1789_s0 = inlined_call_operand.vmem [shape: s32[2,512], index: 0, kind: input, shape index: {}]   ;;  %s1790_s1 = inlined_call_operand.vmem [shape: f32[49,32], index: 1, kind: input, shape index: {}]   ;;  %s1791_s2 = inlined_call_operand.vmem [shape: f32[49,32], index: 2, kind: input, shape index: {}]   ;;  %s1792_s3 = inlined_call_operand.vmem [shape: f32[16,32], index: 3, kind: input, shape index: {}]   ;;  %s1793_s4 = inlined_call_operand.vmem [shape: f32[32,4], index: 4, kind: input, shape index: {}]   ;;  %s1794_s5 = inlined_call_operand.vmem [shape: f32[16,6], index: 5, kind: input, shape index: {}]   ;;  %s1795_s6 = inlined_call_operand.hbm [shape: f32[1,512], index: 6, kind: output, shape index: {}]  }
   0x1   :  { %13 = vsyncpa [#allocation3 + $0x1], 0  ;;  %s1434_s21 = smov 0   ;;  %s1436_s22 = smov 0  }
   0x2   :  { %s1438_s23 = smov 0   ;;  %s1440_s24 = smov 0  }
   0x3 LB: > { %s1455_s25 = sadd.s32 4294967295, %s1387_s24   ;;  %s1172_s26 = sadd.s32 4294967294, %s1387_s24   ;;  %s1387_s24 = sphi %s1440_s24, %s1801_s24   ;;  %s1383_s23 = sphi %s1438_s23, %s1800_s23   ;;  %s1379_s22 = sphi %s1436_s22, %s1799_s22   ;;  %s1375_s21 = sphi %s1434_s21, %s1798_s21  }
   0x4   : > { %s1459_s27 = sadd.s32 1, %s1387_s24   ;;  %s157_s28 = sadd.s32 1, %s1383_s23 }
   0x5   : > { %s154_s29 = ssub.s32 %s1387_s24, %s1459_s27  ;;  %p167_p0 = scmp.ne.s32.totalorder %s1383_s23, %s1379_s22 }
   0x6   : > { %p155_p1 = scmp.eq.s32.totalorder %s154_s29, 0  ;;  %p168_p2 = scmp.eq.s32.totalorder %s1455_s25, 1 }
   0x7   : > { %p173_p3 = scmp.ne.s32.totalorder %s1379_s22, %s1375_s21  ;;  %p174_p4 = scmp.eq.s32.totalorder %s1172_s26, 1 }
   0x8   : > { %s1470_s30 = scalar_select %p155_p1, %s1383_s23, %s157_s28  }
   0x9   : > { %p1472_p5 = por %p168_p2, %p167_p0  ;;  %p1476_p6 = por %p174_p4, %p173_p3 }
   0xa   : > { %p1175_p7 = scmp.ge.s32.totalorder %s1387_s24, 1  ;;  %p216_p8 = scmp.lt.s32.totalorder %s1387_s24, 3 }
   0xc   : > { %p217_p9 = pnand %p1175_p7, %p216_p8 }
   0xd   : > { %s1177_s9 = sshll.u32 (!%p217_p9), %s1455_s25, 1  ;;  %s243_s15 = sand.u32 (!%p217_p9), 1, %s1379_s22  }
   0xe   : > { %220 = sbr.rel (%p217_p9) target bundleno = 627 (0x273), region = 44  ;;  %p247_p10 = scmp.lt.s32.totalorder (!%p217_p9), %s1177_s9, 3 }
   0xf   : > { %s1176_s16 = sshll.u32 (!%p217_p9), %s243_s15, 1  ;;  %s1099_s29 = scalar_lea.sflag (!%p217_p9), [#allocation3], %s243_s15 }
  0x10   : > { %s245_s18 = scalar_lea.vmem (!%p217_p9), [#allocation2], %s1176_s16  ;;  %s1398_s10 = smov (!%p217_p9), [#allocation2]  }
  0x11   : > { %s1113_s19 = sshll.u32 (!%p217_p9), %s245_s18, 4  ;;  %s1114_s19 = int_to_ptr.vmem [resolvable:$true] %s1113_s19 }
  0x13   : > { %v254_v0 = vlaneseq  ;;  %v1389_v1 = vmov 0.0   ;;  %v1390_v3 = vmov 0   ;;  %s1803_s9 = smov (!%p247_p10, %s1177_s9), 3  ;;  %v1493_v4 = vld [vmem:[%s1793_s4 + $0x10] sm:$0xff]  ;;  %v1503_v9 = vld [vmem:[%s1793_s4 + $0x18] sm:$0xff]  ;;  %v1511_v10 = vld [vmem:[%s1793_s4] sm:$0xff] }
  0x14   : > { %432 = vmatprep.mubr.f32.mxu0 %v1389_v1  ;;  %567 = vmatprep.mubr.f32.mxu1 %v1389_v1  ;;  %s1178_s12 = sshll.u32 %s1803_s9, 1  ;;  %v1521_v23 = vld [vmem:[%s1793_s4 + $0x8] sm:$0xff]  ;;  %v1391_v24 = vmov 1   ;;  %v1392_v25 = vmov 1.0   ;;  %v339_v26 = vld [vmem:[%s1790_s1] sm:$0xff]  ;;  %v341_v30 = vld [vmem:[%s1790_s1 + $0x10] sm:$0xff] }
  0x15   : > { %v1486_v2 = vshrl.u32 %v254_v0, 7  ;;  %1292 = vset.pattern.permute.xlu1 %v1390_v3  ;;  %1291 = vset.pattern.permute.xlu0 %v1390_v3  ;;  %s250_s17 = scalar_lea.vmem %s1789_s0, %s1178_s12  ;;  %v475_v27 = vld [vmem:[%s1791_s2] sm:$0xff]  ;;  %v340_v28 = vld [vmem:[%s1790_s1 + $0x8] sm:$0xff]  ;;  %v477_v31 = vld [vmem:[%s1791_s2 + $0x10] sm:$0xff]  ;;  %v1393_v34 = vmov 2   ;;  %v1394_v37 = vmov 3  }
  0x16   : > { %665 = vperm.xlu1 %1292, %v1493_v4   ;;  %v253_v11 = vld [vmem:[%s250_s17] sm:$0xf]  ;;  %655 = vperm.xlu0 %1291, %v1511_v10   ;;  %v476_v29 = vld [vmem:[%s1791_s2 + $0x8] sm:$0xff]  ;;  %v342_v32 = vld [vmem:[%s1790_s1 + $0x18] sm:$0xff]  ;;  %v1395_v45 = vmov 4   ;;  %v1396_v49 = vmov 5  }
  0x17   : > { %v261_v5 = vsub.s32 0, %v1486_v2  ;;  %v265_v6 = vsub.s32 2, %v1486_v2  ;;  %v301_v7 = vsub.s32 1, %v1486_v2  ;;  %v305_v8 = vsub.s32 3, %v1486_v2  ;;  %v478_v33 = vld [vmem:[%s1791_s2 + $0x18] sm:$0xff]  ;;  %v343_v35 = vld [vmem:[%s1790_s1 + $0x20] sm:$0xff] }
  0x18   : > { %v258_v12 = vadd.s32 24, %v1486_v2  ;;  %v257_v17 = vadd.s32 16, %v1486_v2  ;;  %v256_v18 = vadd.s32 8, %v1486_v2  ;;  %v479_v36 = vld [vmem:[%s1791_s2 + $0x20] sm:$0xff]  ;;  %v344_v38 = vld [vmem:[%s1790_s1 + $0x28] sm:$0xff]  ;;  %s1234_s17 = sshll.u32 %s1455_s25, 5 }
  0x19   : > { %v266_v13 = vrot.slane %v253_v11, %v265_v6  ;;  %v306_v14 = vrot.slane %v253_v11, %v305_v8  ;;  %v262_v15 = vrot.slane %v253_v11, %v261_v5  ;;  %v302_v16 = vrot.slane %v253_v11, %v301_v7  ;;  %v480_v39 = vld [vmem:[%s1791_s2 + $0x28] sm:$0xff]  ;;  %v345_v40 = vld [vmem:[%s1790_s1 + $0x30] sm:$0x1]  ;;  %v642_v43 = vld [vmem:[%s1794_s5] sm:$0xff]  ;;  %s1111_s28 = scalar_lea.hbm %s1795_s6, %s1234_s17  ;;  %s1327_s9 = scalar_lea.vmem %s1114_s19, 32 }
  0x1a   : > { %670 = vperm.xlu1 %1292, %v1503_v9   ;;  %660 = vperm.xlu0 %1291, %v1521_v23   ;;  %v481_v41 = vld [vmem:[%s1791_s2 + $0x30] sm:$0x1]  ;;  %v643_v42 = vld [vmem:[%s1794_s5 + $0x8] sm:$0xff]  ;;  %v644_v44 = vld [vmem:[%s1794_s5] sm:$0x1]  ;;  %p1328_p11 = scmp.ne.s32.totalorder %s1114_s19, %s1327_s9  ;;  %s1331_s25 = sshll.u32 %s1398_s10, 4  ;;  %s1332_s25 = int_to_ptr.vmem [resolvable:$false] %s1331_s25 }
  0x1b   : > { %v274_v19 = vrot.slane %v266_v13, %v261_v5  ;;  %v314_v20 = vrot.slane %v306_v14, %v301_v7  ;;  %v270_v21 = vrot.slane %v262_v15, %v261_v5  ;;  %v310_v22 = vrot.slane %v302_v16, %v301_v7  ;;  %s1333_s11 = scalar_lea.vmem %s1332_s25, 64  ;;  %p1334_p0 = scmp.lt.s32.totalorder %s1114_s19, %s1332_s25 }
  0x1c   : > { %p1329_p12 = pnand %p1328_p11, %p1472_p5  ;;  %p1335_p1 = scmp.lt.s32.totalorder %s1333_s11, %s1327_s9 }
  0x1d   : > { %vm282_vm0 = vcmp.eq.s32.totalorder %v258_v12, %v274_v19  ;;  %vm322_vm1 = vcmp.eq.s32.totalorder %v258_v12, %v314_v20  ;;  %vm281_vm2 = vcmp.eq.s32.totalorder %v258_v12, %v270_v21  ;;  %vm321_vm3 = vcmp.eq.s32.totalorder %v258_v12, %v310_v22 }
  0x1e   : > { %1294 = vset.pattern.permute.xlu1 %v1391_v24  ;;  %1195 = vmatprep.subr.msk.mxu0 %vm282_vm0, %v1392_v25  ;;  %vm280_vm4 = vcmp.eq.s32.totalorder %v257_v17, %v274_v19  ;;  %vm320_vm5 = vcmp.eq.s32.totalorder %v257_v17, %v314_v20  ;;  %vm279_vm6 = vcmp.eq.s32.totalorder %v257_v17, %v270_v21  ;;  %vm346_vm0 = vcmask 261120   ;;  %p1330_p13 = pneg %p1329_p12  ;;  %p1336_p2 = por %p1335_p1, %p1334_p0 }
  0x1f   : > { %1210 = vmatprep.subr.msk.mxu1 %vm322_vm1, %v1392_v25  ;;  %1196 = vmatpush1.msk.msra.mxu0 %vm281_vm2, %v1392_v25  ;;  %vm319_vm7 = vcmp.eq.s32.totalorder %v257_v17, %v310_v22  ;;  %vm278_vm8 = vcmp.eq.s32.totalorder %v256_v18, %v274_v19  ;;  %vm318_vm9 = vcmp.eq.s32.totalorder %v256_v18, %v314_v20  ;;  %vm1095_vm1 = vcmp.lt.s32.totalorder %v254_v0, 256 }
  0x20   : > { %1211 = vmatpush1.msk.msra.mxu1 %vm321_vm3, %v1392_v25  ;;  %1197 = vmatprep.subr.msk.mxu0 %vm280_vm4, %v1392_v25  ;;  %vm277_vm10 = vcmp.eq.s32.totalorder %v256_v18, %v270_v21  ;;  %vm317_vm11 = vcmp.eq.s32.totalorder %v256_v18, %v310_v22  ;;  %vm276_vm12 = vcmp.eq.s32.totalorder %v1486_v2, %v274_v19  ;;  %p1337_p3 = pnand %p1336_p2, %p1330_p13 }
  0x21   : > { %1212 = vmatprep.subr.msk.mxu1 %vm320_vm5, %v1392_v25  ;;  %1198 = vmatpush1.msk.msra.mxu0 %vm279_vm6, %v1392_v25  ;;  %vm316_vm13 = vcmp.eq.s32.totalorder %v1486_v2, %v314_v20  ;;  %vm275_vm14 = vcmp.eq.s32.totalorder %v1486_v2, %v270_v21  ;;  %vm315_vm15 = vcmp.eq.s32.totalorder %v1486_v2, %v310_v22 }
  0x22   : > { %1213 = vmatpush1.msk.msra.mxu1 %vm319_vm7, %v1392_v25  ;;  %1199 = vmatprep.subr.msk.mxu0 %vm278_vm8, %v1392_v25 }
  0x23   : > { %1214 = vmatprep.subr.msk.mxu1 %vm318_vm9, %v1392_v25  ;;  %1200 = vmatpush1.msk.msra.mxu0 %vm277_vm10, %v1392_v25 }
  0x24   : > { %1215 = vmatpush1.msk.msra.mxu1 %vm317_vm11, %v1392_v25  ;;  %1201 = vmatprep.subr.msk.mxu0 %vm276_vm12, %v1392_v25 }
  0x25   : > { %1216 = vmatprep.subr.msk.mxu1 %vm316_vm13, %v1392_v25  ;;  %1202 = vmatpush1.msk.msra.mxu0 %vm275_vm14, %v1392_v25 }
  0x26   : > { %1217 = vmatpush1.msk.msra.mxu1 %vm315_vm15, %v1392_v25  ;;  %1203 = vmatmul.mubr.msk.f32.vlgmr.msra.gmra.mxu0 %vm346_vm0, %v339_v26 }
  0x27   : > { %1218 = vmatmul.mubr.msk.f32.vlgmr.msra.gmra.mxu1 %vm346_vm0, %v475_v27  ;;  %438 = vmatprep.mubr.f32.mxu0 %v1389_v1 }
  0x28   : > { %573 = vmatprep.mubr.f32.mxu1 %v1389_v1  ;;  %694 = vperm.xlu1 %1294, %v1521_v23  }
  0x29   : > { %1293 = vset.pattern.permute.xlu0 %v1391_v24 }
  0x2a   : > { %690 = vperm.xlu0 %1293, %v1511_v10   ;;  %1204 = vmatmul.mubr.msk.f32.gmra.mxu0 %vm346_vm0, %v340_v28 }
  0x2b   : > { %1219 = vmatmul.mubr.msk.f32.gmra.mxu1 %vm346_vm0, %v476_v29  ;;  %444 = vmatprep.mubr.f32.mxu0 %v1389_v1 }
  0x2c   : > { %579 = vmatprep.mubr.f32.mxu1 %v1389_v1  ;;  %698 = vperm.xlu1 %1294, %v1493_v4  }
  0x2e   : > { %702 = vperm.xlu0 %1293, %v1503_v9   ;;  %1205 = vmatmul.mubr.msk.f32.gmra.mxu0 %vm346_vm0, %v341_v30 }
  0x2f   : > { %1220 = vmatmul.mubr.msk.f32.gmra.mxu1 %vm346_vm0, %v477_v31  ;;  %450 = vmatprep.mubr.f32.mxu0 %v1389_v1 }
  0x30   : > { %585 = vmatprep.mubr.f32.mxu1 %v1389_v1  ;;  %1295 = vset.pattern.permute.xlu1 %v1393_v34 }
  0x31   : > { %807 = vperm.xlu1 %1295, %v1503_v9  }
  0x32   : > { %1296 = vset.pattern.permute.xlu0 %v1393_v34  ;;  %1206 = vmatmul.mubr.msk.f32.gmra.mxu0 %vm346_vm0, %v342_v32 }
  0x33   : > { %1221 = vmatmul.mubr.msk.f32.gmra.mxu1 %vm346_vm0, %v478_v33  ;;  %456 = vmatprep.mubr.f32.mxu0 %v1389_v1 }
  0x34   : > { %591 = vmatprep.mubr.f32.mxu1 %v1389_v1  ;;  %803 = vperm.xlu0 %1296, %v1493_v4  }
  0x35   : > { %1297 = vset.pattern.permute.xlu1 %v1394_v37 }
  0x36   : > { %1207 = vmatmul.mubr.msk.f32.gmra.mxu0 %vm346_vm0, %v343_v35  ;;  %831 = vperm.xlu1 %1297, %v1503_v9  }
  0x37   : > { %1222 = vmatmul.mubr.msk.f32.gmra.mxu1 %vm346_vm0, %v479_v36  ;;  %462 = vmatprep.mubr.f32.mxu0 %v1389_v1 }
  0x38   : > { %597 = vmatprep.mubr.f32.mxu1 %v1389_v1  ;;  %1299 = vset.pattern.permute.xlu0 %v1394_v37 }
  0x39   : > { %827 = vperm.xlu0 %1299, %v1493_v4  }
  0x3a   : > { %1208 = vmatmul.mubr.msk.f32.gmra.mxu0 %vm346_vm0, %v344_v38  ;;  %1298 = vset.pattern.permute.xlu1 %v1393_v34 }
  0x3b   : > { %1223 = vmatmul.mubr.msk.f32.gmra.mxu1 %vm346_vm0, %v480_v39  ;;  %468 = vmatprep.mubr.f32.mxu0 %v1389_v1 }
  0x3c   : > { %603 = vmatprep.mubr.f32.mxu1 %v1389_v1  ;;  %799 = vperm.xlu1 %1298, %v1521_v23  }
  0x3d   : > { %819 = vperm.xlu0 %1299, %v1511_v10  }
  0x3e   : > { %1209 = vmatmul.mubr.msk.f32.gmra.mxu0 %vm346_vm0, %v345_v40 }
  0x3f   : > { %1224 = vmatmul.mubr.msk.f32.gmra.mxu1 %vm346_vm0, %v481_v41  ;;  %924 = vmatprep.mubr.f32.mxu0 %v1389_v1 }
  0x40   : > { %930 = vmatprep.mubr.f32.mxu1 %v1389_v1  ;;  %795 = vperm.xlu1 %1298, %v1511_v10  }
  0x41   : > { %1302 = vset.pattern.permute.xlu0 %v1390_v3 }
  0x42   : > { %851 = vperm.xlu0 %1302, %v643_v42  }
  0x44   : > { %1300 = vset.pattern.permute.xlu1 %v1394_v37 }
  0x45   : > { %823 = vperm.xlu1 %1300, %v1521_v23  }
  0x46   : > { %1304 = vset.pattern.permute.xlu0 %v1393_v34 }
  0x47   : > { %1007 = vperm.xlu0 %1304, %v642_v43  }
  0x49   : > { %1301 = vset.pattern.permute.xlu1 %v1390_v3 }
  0x4a   : > { %846 = vperm.xlu1 %1301, %v642_v43  }
  0x4b   : > { %1307 = vset.pattern.permute.xlu0 %v1394_v37 }
  0x4c   : > { %1034 = vperm.xlu0 %1307, %v643_v42  }
  0x4e   : > { %1303 = vset.pattern.permute.xlu1 %v1391_v24 }
  0x4f   : > { %995 = vperm.xlu1 %1303, %v642_v43  }
  0x50   : > { %1310 = vset.pattern.permute.xlu0 %v1396_v49 }
  0x53   : > { %999 = vperm.xlu1 %1303, %v643_v42  }
  0x57   : > { %1305 = vset.pattern.permute.xlu1 %v1393_v34 }
  0x58   : > { %1011 = vperm.xlu1 %1305, %v643_v42  }
  0x5c   : > { %1306 = vset.pattern.permute.xlu1 %v1394_v37 }
  0x5d   : > { %1030 = vperm.xlu1 %1306, %v642_v43  }
  0x61   : > { %1308 = vset.pattern.permute.xlu1 %v1395_v45 }
  0x62   : > { %1022 = vperm.xlu1 %1308, %v644_v44  }
  0x66   : > { %1309 = vset.pattern.permute.xlu1 %v1396_v49 }
  0x67   : > { %1058 = vperm.xlu1 %1309, %v644_v44  }
  0x91   : > { %v1624_v46 = vpop.permute.xlu1 %665  ;;  %v656_v8 = vpop.permute.xlu0 %655 }
  0x95   : > { %v1626_v47 = vpop.permute.xlu1 %670  ;;  %v661_v23 = vpop.permute.xlu0 %660 }
  0xa3   : > { %v1628_v48 = vpop.permute.xlu1 %694 }
  0xa5   : > { %v691_v40 = vpop.permute.xlu0 %690 }
  0xa7   : > { %v1630_v50 = vpop.permute.xlu1 %698 }
  0xac   : > { %v1632_v51 = vpop.permute.xlu1 %807 }
  0xb1   : > { %v1634_v52 = vpop.permute.xlu1 %831 }
  0xb7   : > { %v1636_v53 = vpop.permute.xlu1 %799 }
  0xbb   : > { %v1638_v54 = vpop.permute.xlu1 %795 }
  0xc0   : > { %v1640_v55 = vpop.permute.xlu1 %823 }
  0xc5   : > { %v1642_v56 = vpop.permute.xlu1 %846 }
  0xca   : > { %v1644_v57 = vpop.permute.xlu1 %995 }
  0xce   : > { %v1648_v6 = vpop.permute.xlu1 %999 }
  0xd3   : > { %v1650_v21 = vpop.permute.xlu1 %1011 }
  0xd8   : > { %v1652_v38 = vpop.permute.xlu1 %1030 }
  0xe6   : > { %v434_v58 = vpop.f32.mrf.mxu0 }
  0xe7   : > { %v569_v59 = vpop.f32.mrf.mxu1 }
  0xe8   : > { %v610_v60 = vmul.f32 %v569_v59, %v434_v58  ;;  %v436_v61 = vpop.f32.mrf.mxu0 }
  0xe9   : > { %v571_v62 = vpop.f32.mrf.mxu1 }
  0xea   : > { %v612_v63 = vrot.slane %v610_v60, 4  ;;  %v1646_v1 = vmul.f32 %v571_v62, %v436_v61  ;;  %v440_v3 = vpop.f32.mrf.mxu0 }
  0xeb   : > { %v575_v4 = vpop.f32.mrf.mxu1 }
  0xec   : > { %v613_v5 = vadd.f32 %v612_v63, %v610_v60  ;;  %v624_v7 = vmul.f32 %v575_v4, %v440_v3  ;;  %v442_v9 = vpop.f32.mrf.mxu0 }
  0xed   : > { %v577_v10 = vpop.f32.mrf.mxu1 }
  0xee   : > { %v626_v11 = vrot.slane %v624_v7, 4  ;;  %v625_v12 = vmul.f32 %v577_v10, %v442_v9  ;;  %v614_v13 = vrot.slane %v613_v5, 2  ;;  %v446_v14 = vpop.f32.mrf.mxu0 }
  0xef   : > { %v581_v15 = vpop.f32.mrf.mxu1 }
  0xf0   : > { %v627_v16 = vadd.f32 %v626_v11, %v624_v7  ;;  %v632_v17 = vrot.slane %v625_v12, 4  ;;  %v448_v18 = vpop.f32.mrf.mxu0  ;;  %v615_v24 = vadd.f32 %v614_v13, %v613_v5  ;;  %v645_v41 = vadd.f32 %v581_v15, %v446_v14 }
  0xf1   : > { %v583_v19 = vpop.f32.mrf.mxu1 }
  0xf2   : > { %v628_v20 = vrot.slane %v627_v16, 2  ;;  %v633_v22 = vadd.f32 %v632_v17, %v625_v12  ;;  %v452_v25 = vpop.f32.mrf.mxu0  ;;  %v616_v33 = vrot.slane %v615_v24, 1  ;;  %v646_v42 = vadd.f32 %v583_v19, %v448_v18 }
  0xf3   : > { %v587_v26 = vpop.f32.mrf.mxu1 }
  0xf4   : > { %v629_v27 = vadd.f32 %v628_v20, %v627_v16  ;;  %v634_v28 = vrot.slane %v633_v22, 2  ;;  %v454_v29 = vpop.f32.mrf.mxu0  ;;  %v647_v43 = vadd.f32 %v587_v26, %v452_v25  ;;  %v617_v61 = vadd.f32 %v616_v33, %v615_v24  ;;  %v703_v24 = vpop.permute.xlu0 %702 }
  0xf5   : > { %v589_v30 = vpop.f32.mrf.mxu1  ;;  %v1660_v25 = vpop.permute.xlu1 %1022 }
  0xf6   : > { %v630_v31 = vrot.slane %v629_v27, 1  ;;  %v635_v32 = vadd.f32 %v634_v28, %v633_v22  ;;  %v458_v34 = vpop.f32.mrf.mxu0  ;;  %v648_v62 = vadd.f32 %v589_v30, %v454_v29 }
  0xf7   : > { %v593_v35 = vpop.f32.mrf.mxu1 }
  0xf8   : > { %v631_v36 = vadd.f32 %v630_v31, %v629_v27  ;;  %v636_v37 = vrot.slane %v635_v32, 1  ;;  %v649_v39 = vadd.f32 %v593_v35, %v458_v34  ;;  %v460_v44 = vpop.f32.mrf.mxu0  ;;  %v1025_v34 = vmul.f32 %v1660_v25, %v617_v61 }
  0xf9   : > { %v595_v45 = vpop.f32.mrf.mxu1 }
  0xfa   : > { %v637_v49 = vadd.f32 %v636_v37, %v635_v32  ;;  %v673_v58 = vmul.f32 %v656_v8, %v631_v36  ;;  %v675_v59 = vmul.f32 %v661_v23, %v631_v36  ;;  %v677_v60 = vmul.f32 %v1624_v46, %v631_v36  ;;  %v464_v3 = vpop.f32.mrf.mxu0 }
  0xfb   : > { %v650_v63 = vadd.f32 %v595_v45, %v460_v44  ;;  %v599_v4 = vpop.f32.mrf.mxu1  ;;  %v679_v5 = vmul.f32 %v1626_v47, %v631_v36 }
  0xfc   : > { %v674_v7 = vmul.f32 %v656_v8, %v637_v49  ;;  %v676_v9 = vmul.f32 %v661_v23, %v637_v49  ;;  %v683_v10 = vadd.f32 %v675_v59, %v647_v43  ;;  %v685_v11 = vadd.f32 %v677_v60, %v649_v39  ;;  %v466_v15 = vpop.f32.mrf.mxu0 }
  0xfd   : > { %v678_v12 = vmul.f32 %v1624_v46, %v637_v49  ;;  %v681_v13 = vadd.f32 %v673_v58, %v645_v41  ;;  %v651_v14 = vadd.f32 %v599_v4, %v464_v3  ;;  %v601_v16 = vpop.f32.mrf.mxu1  ;;  %v680_v17 = vmul.f32 %v1626_v47, %v637_v49 }
  0xfe   : > { %v684_v18 = vadd.f32 %v676_v9, %v648_v62  ;;  %v707_v19 = vadd.f32 %v1628_v48, %v683_v10  ;;  %v709_v20 = vadd.f32 %v1630_v50, %v685_v11  ;;  %v682_v22 = vadd.f32 %v674_v7, %v646_v42  ;;  %v470_v41 = vpop.f32.mrf.mxu0 }
  0xff   : > { %v686_v8 = vadd.f32 %v678_v12, %v650_v63  ;;  %v705_v23 = vadd.f32 %v691_v40, %v681_v13  ;;  %v687_v26 = vadd.f32 %v679_v5, %v651_v14  ;;  %v652_v27 = vadd.f32 %v601_v16, %v466_v15  ;;  %v605_v42 = vpop.f32.mrf.mxu1 }
 0x100   : > { %v708_v46 = vadd.f32 %v1628_v48, %v684_v18  ;;  %v1663_v28 = vmax.f32 %v707_v19, 0.0  ;;  %v1665_v29 = vmax.f32 %v709_v20, 0.0  ;;  %v706_v47 = vadd.f32 %v691_v40, %v682_v22 }
 0x101   : > { %v710_v30 = vadd.f32 %v1630_v50, %v686_v8  ;;  %v1668_v31 = vmax.f32 %v705_v23, 0.0  ;;  %v688_v32 = vadd.f32 %v680_v17, %v652_v27  ;;  %v711_v33 = vadd.f32 %v703_v24, %v687_v26 }
 0x102   : > { %v1671_v35 = vmax.f32 %v708_v46, 0.0  ;;  %v1673_v36 = vmax.f32 %v706_v47, 0.0  ;;  %v744_v48 = vmul.f32 %v1663_v28, %v1663_v28  ;;  %v746_v58 = vmul.f32 %v1665_v29, %v1665_v29 }
 0x103   : > { %v1677_v37 = vmax.f32 %v710_v30, 0.0  ;;  %v721_v39 = vadd.f32 %v1663_v28, %v1668_v31  ;;  %v742_v50 = vmul.f32 %v1668_v31, %v1668_v31  ;;  %v712_v40 = vadd.f32 %v703_v24, %v688_v32 }
 0x104   : > { %v730_v43 = vadd.f32 %v1671_v35, %v1673_v36  ;;  %v743_v44 = vmul.f32 %v1673_v36, %v1673_v36  ;;  %v745_v45 = vmul.f32 %v1671_v35, %v1671_v35  ;;  %v1689_v49 = vmax.f32 %v711_v33, 0.0 }
 0x105   : > { %v750_v59 = vadd.f32 %v744_v48, %v742_v50  ;;  %v1693_v60 = vmax.f32 %v712_v40, 0.0  ;;  %v722_v61 = vadd.f32 %v721_v39, %v1665_v29  ;;  %v747_v62 = vmul.f32 %v1677_v37, %v1677_v37 }
 0x106   : > { %v759_v63 = vadd.f32 %v745_v45, %v743_v44  ;;  %v731_v3 = vadd.f32 %v730_v43, %v1677_v37  ;;  %v1018_v4 = vadd.f32 %v605_v42, %v470_v41  ;;  %v748_v7 = vmul.f32 %v1689_v49, %v1689_v49 }
 0x107   : > { %v723_v5 = vadd.f32 %v722_v61, %v1689_v49  ;;  %v751_v9 = vadd.f32 %v750_v59, %v746_v58  ;;  %v749_v11 = vmul.f32 %v1693_v60, %v1693_v60 }
 0x108   : > { %v732_v10 = vadd.f32 %v731_v3, %v1693_v60  ;;  %v760_v12 = vadd.f32 %v759_v63, %v747_v62  ;;  %v1705_v13 = vadd.f32 %v1025_v34, %v1018_v4 }
 0x109   : > { %v724_v14 = vrot.slane %v723_v5, 4  ;;  %v752_v15 = vadd.f32 %v751_v9, %v748_v7  ;;  %v804_v7 = vpop.permute.xlu0 %803 }
 0x10a   : > { %v733_v16 = vrot.slane %v732_v10, 4  ;;  %v761_v17 = vadd.f32 %v760_v12, %v749_v11 }
 0x10b   : > { %v725_v18 = vadd.f32 %v724_v14, %v723_v5  ;;  %v753_v19 = vrot.slane %v752_v15, 4 }
 0x10c   : > { %v734_v20 = vadd.f32 %v733_v16, %v732_v10  ;;  %v762_v22 = vrot.slane %v761_v17, 4 }
 0x10d   : > { %v726_v24 = vrot.slane %v725_v18, 2  ;;  %v754_v8 = vadd.f32 %v753_v19, %v752_v15 }
 0x10e   : > { %v735_v23 = vrot.slane %v734_v20, 2  ;;  %v763_v26 = vadd.f32 %v762_v22, %v761_v17 }
 0x10f   : > { %v727_v27 = vadd.f32 %v726_v24, %v725_v18  ;;  %v755_v46 = vrot.slane %v754_v8, 2 }
 0x110   : > { %v736_v47 = vadd.f32 %v735_v23, %v734_v20  ;;  %v764_v30 = vrot.slane %v763_v26, 2 }
 0x111   : > { %v728_v32 = vrot.slane %v727_v27, 1  ;;  %v756_v33 = vadd.f32 %v755_v46, %v754_v8 }
 0x112   : > { %v737_v34 = vrot.slane %v736_v47, 1  ;;  %v765_v48 = vadd.f32 %v764_v30, %v763_v26  ;;  %v828_v26 = vpop.permute.xlu0 %827 }
 0x113   : > { %v729_v39 = vadd.f32 %v728_v32, %v727_v27  ;;  %v757_v50 = vrot.slane %v756_v33, 1 }
 0x114   : > { %v738_v40 = vadd.f32 %v737_v34, %v736_v47  ;;  %v766_v41 = vrot.slane %v765_v48, 1 }
 0x115   : > { %v740_v42 = vmul.f32 0.03125, %v729_v39  ;;  %v758_v43 = vadd.f32 %v757_v50, %v756_v33  ;;  %v843_v50 = vld [vmem:[%s1792_s3 + $0x8] sm:$0xff] }
 0x116   : > { %v741_v44 = vmul.f32 0.03125, %v738_v40  ;;  %v767_v45 = vadd.f32 %v766_v41, %v765_v48  ;;  %v1733_v40 = vpop.f32.mrf.mxu0  ;;  %v1735_v41 = vpop.f32.mrf.mxu1 }
 0x117   : > { %v768_v58 = vmul.f32 0.03125, %v758_v43  ;;  %v770_v59 = vmul.f32 %v740_v42, %v740_v42  ;;  %v780_v9 = vsub.f32 %v1689_v49, %v740_v42  ;;  %v778_v10 = vsub.f32 %v1665_v29, %v740_v42 }
 0x118   : > { %v769_v61 = vmul.f32 0.03125, %v767_v45  ;;  %v771_v62 = vmul.f32 %v741_v44, %v741_v44  ;;  %v781_v12 = vsub.f32 %v1693_v60, %v741_v44  ;;  %v779_v14 = vsub.f32 %v1677_v37, %v741_v44 }
 0x119   : > { %v772_v63 = vsub.f32 %v768_v58, %v770_v59  ;;  %v777_v15 = vsub.f32 %v1671_v35, %v741_v44  ;;  %v776_v19 = vsub.f32 %v1663_v28, %v740_v42  ;;  %v775_v22 = vsub.f32 %v1673_v36, %v741_v44 }
 0x11a   : > { %v773_v3 = vsub.f32 %v769_v61, %v771_v62  ;;  %v774_v49 = vsub.f32 %v1668_v31, %v740_v42 }
 0x11b   : > { %v782_v4 = vadd.f32 1e-05, %v772_v63 }
 0x11c   : > { %v783_v5 = vadd.f32 1e-05, %v773_v3 }
 0x11d   : > { %1311 = vrsqrt.f32 %v782_v4 }
 0x11e   : > { %1313 = vrsqrt.f32 %v783_v5 }
 0x12a   : > { %v1312_v11 = vpop.eup %1311 }
 0x12b   : > { %v1314_v16 = vpop.eup %1313  ;;  %v792_v17 = vmul.f32 %v1312_v11, %v780_v9  ;;  %v790_v18 = vmul.f32 %v1312_v11, %v778_v10  ;;  %v788_v23 = vmul.f32 %v1312_v11, %v776_v19  ;;  %v786_v46 = vmul.f32 %v1312_v11, %v774_v49 }
 0x12c   : > { %v791_v20 = vmul.f32 %v1314_v16, %v779_v14  ;;  %v793_v24 = vmul.f32 %v1314_v16, %v781_v12  ;;  %v789_v8 = vmul.f32 %v1314_v16, %v777_v15  ;;  %v787_v37 = vmul.f32 %v1314_v16, %v775_v22 }
 0x12d   : > { %v816_v29 = vmul.f32 %v1632_v51, %v792_v17  ;;  %v814_v27 = vmul.f32 %v804_v7, %v790_v18  ;;  %v812_v30 = vmul.f32 %v1636_v53, %v788_v23  ;;  %v810_v34 = vmul.f32 %v1638_v54, %v786_v46 }
 0x12e   : > { %v815_v60 = vmul.f32 %v804_v7, %v791_v20  ;;  %v817_v35 = vmul.f32 %v1632_v51, %v793_v24  ;;  %v813_v28 = vmul.f32 %v1636_v53, %v789_v8  ;;  %v811_v31 = vmul.f32 %v1638_v54, %v787_v37  ;;  %v820_v51 = vpop.permute.xlu0 %819  ;;  %v842_v54 = vld [vmem:[%s1792_s3] sm:$0xff] }
 0x12f   : > { %v840_v36 = vadd.f32 %v1634_v52, %v816_v29  ;;  %v838_v33 = vadd.f32 %v828_v26, %v814_v27  ;;  %v834_v39 = vadd.f32 %v820_v51, %v810_v34 }
 0x130   : > { %v841_v47 = vadd.f32 %v1634_v52, %v817_v35  ;;  %v839_v32 = vadd.f32 %v828_v26, %v815_v60  ;;  %v837_v48 = vadd.f32 %v1640_v55, %v813_v28  ;;  %v836_v52 = vadd.f32 %v1640_v55, %v812_v30 }
 0x131   : > { %v835_v53 = vadd.f32 %v820_v51, %v811_v31 }
 0x132   : > { %884 = vmatprep.subr.mxu0 %v841_v47  ;;  %1235 = vmatprep.subr.mxu1 %v841_v47  ;;  %v852_v55 = vpop.permute.xlu0 %851 }
 0x133   : > { %885 = vmatpush1.msra.mxu0 %v840_v36  ;;  %1239 = vmatpush1.msra.mxu1 %v840_v36 }
 0x134   : > { %886 = vmatprep.subr.mxu0 %v839_v32  ;;  %1236 = vmatprep.subr.mxu1 %v839_v32 }
 0x135   : > { %887 = vmatpush1.msra.mxu0 %v838_v33  ;;  %1240 = vmatpush1.msra.mxu1 %v838_v33 }
 0x136   : > { %888 = vmatprep.subr.mxu0 %v837_v48  ;;  %1237 = vmatprep.subr.mxu1 %v837_v48 }
 0x137   : > { %889 = vmatpush1.msra.mxu0 %v836_v52  ;;  %1241 = vmatpush1.msra.mxu1 %v836_v52 }
 0x138   : > { %890 = vmatprep.subr.mxu0 %v835_v53  ;;  %1238 = vmatprep.subr.mxu1 %v835_v53 }
 0x139   : > { %891 = vmatpush1.msra.mxu0 %v834_v39  ;;  %1242 = vmatpush1.msra.mxu1 %v834_v39 }
 0x13a   : > { %1225 = vmatmul.mubr.msk.f32.vlgmr.msra.gmra.mxu0 %vm346_vm0, %v842_v54  ;;  %1226 = vmatmul.mubr.msk.f32.vlgmr.msra.gmra.mxu1 %vm346_vm0, %v843_v50 }
 0x1fa   : > { %v926_v42 = vpop.f32.mrf.mxu0  ;;  %v932_v43 = vpop.f32.mrf.mxu1 }
 0x1fb   : > { %v927_v44 = vadd.f32 %v926_v42, %v1642_v56  ;;  %v933_v45 = vadd.f32 %v932_v43, %v852_v55  ;;  %v618_v43 = vrot.slane %v1646_v1, 4 }
 0x1fc   : > { %v928_v58 = vpop.f32.mrf.mxu0  ;;  %v934_v59 = vpop.f32.mrf.mxu1 }
 0x1fd   : > { %v937_v61 = vmax.f32 %v927_v44, 0.0  ;;  %v939_v62 = vmax.f32 %v933_v45, 0.0  ;;  %v929_v63 = vadd.f32 %v928_v58, %v1642_v56  ;;  %v935_v3 = vadd.f32 %v934_v59, %v852_v55  ;;  %v1008_v44 = vpop.permute.xlu0 %1007 }
 0x1ff   : > { %v958_v4 = vmul.f32 %v937_v61, %v937_v61  ;;  %v941_v5 = vadd.f32 %v939_v62, %v937_v61  ;;  %v960_v7 = vmul.f32 %v939_v62, %v939_v62  ;;  %v938_v9 = vmax.f32 %v929_v63, 0.0 }
 0x200   : > { %v940_v10 = vmax.f32 %v935_v3, 0.0 }
 0x201   : > { %v942_v11 = vrot.slane %v941_v5, 4  ;;  %v962_v12 = vadd.f32 %v960_v7, %v958_v4  ;;  %v959_v14 = vmul.f32 %v938_v9, %v938_v9  ;;  %v619_v4 = vadd.f32 %v618_v43, %v1646_v1 }
 0x202   : > { %v948_v15 = vadd.f32 %v940_v10, %v938_v9  ;;  %v961_v16 = vmul.f32 %v940_v10, %v940_v10 }
 0x203   : > { %v943_v17 = vadd.f32 %v942_v11, %v941_v5  ;;  %v963_v18 = vrot.slane %v962_v12, 4 }
 0x204   : > { %v949_v19 = vrot.slane %v948_v15, 4  ;;  %v969_v20 = vadd.f32 %v961_v16, %v959_v14  ;;  %v1035_v16 = vpop.permute.xlu0 %1034 }
 0x205   : > { %v944_v22 = vrot.slane %v943_v17, 2  ;;  %v964_v24 = vadd.f32 %v963_v18, %v962_v12 }
 0x206   : > { %v950_v8 = vadd.f32 %v949_v19, %v948_v15  ;;  %v970_v49 = vrot.slane %v969_v20, 4 }
 0x207   : > { %v945_v56 = vadd.f32 %v944_v22, %v943_v17  ;;  %v965_v29 = vrot.slane %v964_v24, 2 }
 0x208   : > { %v951_v23 = vrot.slane %v950_v8, 2  ;;  %v971_v60 = vadd.f32 %v970_v49, %v969_v20 }
 0x209   : > { %v946_v26 = vrot.slane %v945_v56, 1  ;;  %v966_v37 = vadd.f32 %v965_v29, %v964_v24 }
 0x20a   : > { %v952_v35 = vadd.f32 %v951_v23, %v950_v8  ;;  %v972_v27 = vrot.slane %v971_v60, 2 }
 0x20b   : > { %v947_v46 = vadd.f32 %v946_v26, %v945_v56  ;;  %v967_v47 = vrot.slane %v966_v37, 1 }
 0x20c   : > { %v953_v28 = vrot.slane %v952_v35, 1  ;;  %v973_v36 = vadd.f32 %v972_v27, %v971_v60 }
 0x20d   : > { %v956_v30 = vmul.f32 0.0625, %v947_v46  ;;  %v968_v32 = vadd.f32 %v967_v47, %v966_v37 }
 0x20e   : > { %v954_v31 = vadd.f32 %v953_v28, %v952_v35  ;;  %v974_v33 = vrot.slane %v973_v36, 1  ;;  %v1019_v28 = vadd.f32 %v1735_v41, %v1733_v40 }
 0x20f   : > { %v976_v34 = vmul.f32 0.0625, %v968_v32  ;;  %v978_v51 = vmul.f32 %v956_v30, %v956_v30  ;;  %v984_v45 = vsub.f32 %v939_v62, %v956_v30  ;;  %v982_v58 = vsub.f32 %v937_v61, %v956_v30 }
 0x210   : > { %v957_v48 = vmul.f32 0.0625, %v954_v31  ;;  %v975_v52 = vadd.f32 %v974_v33, %v973_v36  ;;  %v620_v62 = vrot.slane %v619_v4, 2 }
 0x211   : > { %v980_v53 = vsub.f32 %v976_v34, %v978_v51 }
 0x212   : > { %v977_v39 = vmul.f32 0.0625, %v975_v52  ;;  %v979_v54 = vmul.f32 %v957_v48, %v957_v48  ;;  %v985_v5 = vsub.f32 %v940_v10, %v957_v48  ;;  %v983_v7 = vsub.f32 %v938_v9, %v957_v48 }
 0x213   : > { %v986_v50 = vadd.f32 1e-05, %v980_v53  ;;  %v621_v8 = vadd.f32 %v620_v62, %v619_v4 }
 0x214   : > { %v981_v55 = vsub.f32 %v977_v39, %v979_v54 }
 0x215   : > { %1315 = vrsqrt.f32 %v986_v50  ;;  %v622_v26 = vrot.slane %v621_v8, 1 }
 0x216   : > { %v987_v42 = vadd.f32 1e-05, %v981_v55 }
 0x218   : > { %1317 = vrsqrt.f32 %v987_v42 }
 0x222   : > { %v1316_v59 = vpop.eup %1315 }
 0x223   : > { %v990_v63 = vmul.f32 %v1316_v59, %v982_v58  ;;  %v992_v3 = vmul.f32 %v1316_v59, %v984_v45 }
 0x225   : > { %v1318_v11 = vpop.eup %1317  ;;  %v1002_v12 = vmul.f32 %v1644_v57, %v990_v63  ;;  %v1004_v14 = vmul.f32 %v1648_v6, %v992_v3 }
 0x226   : > { %v991_v15 = vmul.f32 %v1318_v11, %v983_v7  ;;  %v993_v17 = vmul.f32 %v1318_v11, %v985_v5 }
 0x227   : > { %v1014_v18 = vadd.f32 %v1008_v44, %v1002_v12  ;;  %v1016_v19 = vadd.f32 %v1650_v21, %v1004_v14 }
 0x228   : > { %v1003_v61 = vmul.f32 %v1644_v57, %v991_v15  ;;  %v1005_v20 = vmul.f32 %v1648_v6, %v993_v17  ;;  %v623_v6 = vadd.f32 %v622_v26, %v621_v8 }
 0x229   : > { %v1037_v1 = vmul.f32 %v1652_v38, %v1014_v18  ;;  %v1039_v10 = vmul.f32 %v1035_v16, %v1016_v19 }
 0x22a   : > { %v1015_v9 = vadd.f32 %v1008_v44, %v1003_v61  ;;  %v1017_v22 = vadd.f32 %v1650_v21, %v1005_v20  ;;  %v1026_v30 = vmul.f32 %v1660_v25, %v623_v6  ;;  %v1397_v25 = vmov 1966171168  }
 0x22b   : > { %v1041_v24 = vadd.f32 %v1039_v10, %v1037_v1  ;;  %v1079_v55 = vunpack.c.l.s4 %v1397_v25 }
 0x22c   : > { %v1038_v49 = vmul.f32 %v1652_v38, %v1015_v9  ;;  %v1040_v56 = vmul.f32 %v1035_v16, %v1017_v22  ;;  %v1059_v38 = vpop.permute.xlu1 %1058  ;;  %v1028_v33 = vadd.f32 %v1026_v30, %v1019_v28 }
 0x22d   : > { %v1042_v29 = vrot.slane %v1041_v24, 4 }
 0x22e   : > { %v1048_v23 = vadd.f32 %v1040_v56, %v1038_v49 }
 0x22f   : > { %v1043_v60 = vadd.f32 %v1042_v29, %v1041_v24 }
 0x230   : > { %v1049_v37 = vrot.slane %v1048_v23, 4 }
 0x231   : > { %v1044_v35 = vrot.slane %v1043_v60, 2 }
 0x232   : > { %v1050_v57 = vadd.f32 %v1049_v37, %v1048_v23 }
 0x233   : > { %v1045_v27 = vadd.f32 %v1044_v35, %v1043_v60 }
 0x234   : > { %v1051_v46 = vrot.slane %v1050_v57, 2 }
 0x235   : > { %v1046_v47 = vrot.slane %v1045_v27, 1 }
 0x236   : > { %v1052_v21 = vadd.f32 %v1051_v46, %v1050_v57 }
 0x237   : > { %v1047_v36 = vadd.f32 %v1046_v47, %v1045_v27 }
 0x238   : > { %v1053_v32 = vrot.slane %v1052_v21, 1 }
 0x239   : > { %v1055_v31 = vadd.f32 %v1047_v36, %v1705_v13  ;;  %v1080_v13 = vunpack.c.0.s8 %v1079_v55 }
 0x23a   : > { %v1054_v34 = vadd.f32 %v1053_v32, %v1052_v21 }
 0x23b   : > { %v1061_v51 = vadd.f32 %v1059_v38, %v1055_v31  ;;  %v1083_v43 = vsub.s32 %v1080_v13, %v1486_v2 }
 0x23c   : > { %v1056_v48 = vadd.f32 %v1054_v34, %v1028_v33 }
 0x23d   : > { %v1227_v52 = vmul.f32 -1.442695, %v1061_v51 }
 0x23e   : > { %v1062_v53 = vadd.f32 %v1059_v38, %v1056_v48 }
 0x23f   : > { %1319 = vpow2.f32 %v1227_v52 }
 0x240   : > { %v1228_v39 = vmul.f32 -1.442695, %v1062_v53 }
 0x242   : > { %1321 = vpow2.f32 %v1228_v39 }
 0x24c   : > { %v1320_v40 = vpop.eup %1319 }
 0x24d   : > { %v1069_v41 = vadd.f32 1.0, %v1320_v40 }
 0x24f   : > { %v1322_v54 = vpop.eup %1321  ;;  %1323 = vrcp.f32 %v1069_v41 }
 0x250   : > { %v1070_v50 = vadd.f32 1.0, %v1322_v54 }
 0x252   : > { %1325 = vrcp.f32 %v1070_v50 }
 0x25c   : > { %v1324_v42 = vpop.eup %1323 }
 0x25f   : > { %v1326_v44 = vpop.eup %1325 }
 0x260   : > { %v1077_v45 = vcombine.low %v1324_v42, %v1326_v44 }
 0x262   : > { %v1084_v58 = vrot.slane %v1077_v45, %v1083_v43 }
 0x264   : > { %v1091_v59 = vrot.slane %v1084_v58, %v1083_v43 }
 0x266   : > { %1097 = vst.msk [vmem:[%s245_s18] sm:$0x3] %vm1095_vm1, %v1091_v59 }
 0x267   : > { %1340 = shalt.err (!%p1337_p3)
}
 0x268   : > { %s1341_s12 = scalar_lea.hbm %s1111_s28, 32  ;;  %s1345_s15 = scalar_lea.hbm %s1795_s6, 64 }
 0x269   : > { %p1342_p4 = scmp.ne.s32.totalorder %s1111_s28, %s1341_s12  ;;  %p1346_p9 = scmp.lt.s32.totalorder %s1111_s28, %s1795_s6 }
 0x26a   : > { %p1347_p10 = scmp.lt.s32.totalorder %s1345_s15, %s1341_s12 }
 0x26b   : > { %p1343_p7 = pnand %p1342_p4, %p1472_p5 }
 0x26c   : > { %p1348_p11 = por %p1347_p10, %p1346_p9 }
 0x26d   : > { %p1344_p8 = pneg %p1343_p7 }
 0x26f   : > { %p1349_p12 = pnand %p1348_p11, %p1344_p8 }
 0x271   : > { %1352 = shalt.err (!%p1349_p12)
}
 0x272   : > { %1243 = dma.vmem_to_hbm [thread:$0]  (%p1472_p5), %s1114_s19, 32, %s1111_s28, %s1099_s29  }
 0x273 PF: > { %p1249_p13 = scmp.ge.s32.totalorder %s1387_s24, 2  ;;  %s1125_s18 = sand.u32 1, %s1375_s21  }
 0x274   : > { %s1126_s20 = scalar_lea.sflag [#allocation3], %s1125_s18 }
 0x275   : > { %p1246_p0 = pnand %p1249_p13, %p1476_p6 }
 0x277   : > { %p1247_p1 = pneg %p1246_p0 }
 0x279   : > { %1370 = dma.done.wait (%p1247_p1), %s1126_s20, 32  }
 0x27a   : > { %1372 = vsyncadd (%p1247_p1), %s1126_s20, 4294967264  ;;  %p16_p2 = scmp.ge.s32.totalorder %s1459_s27, 4   ;;  %s1798_s21 = smov %s1379_s22 }
 0x27b   : > { %s1799_s22 = smov %s1383_s23  ;;  %s1800_s23 = smov %s1470_s30 }
 0x27c   : > { %s1801_s24 = smov %s1459_s27  ;;  %18 = sbr.rel (!%p16_p2) target bundleno = 3 (0x3), region = 79 }
 0x281   :  { %1131 = vsyncpa [#allocation3], 1 }
 0x282   :  { %1133 = vsyncpa [#allocation3 + $0x1], 1 }

</bundles_post_ra>
